<compile_context>
chip_gen: v6e
topology: v6e:2x2x1
jax: 0.10.0
libtpu: 0.0.40
codegen_flags: <defaults>
</compile_context>

<pallas_src>
import functools

import jax
import jax.numpy as jnp
from jax.experimental import pallas as pl
from jax.experimental.pallas import tpu as pltpu

D_IN = 10
D_HID = 10
D_OUT = 10


def _mlp_kernel(x_ref, w1_ref, b1_ref, w2_ref, b2_ref, o_ref):
    # x_ref: (D_IN, TB) -- batch in lanes; o_ref: (D_OUT, TB).
    # w1_ref/w2_ref: PyTorch (out, in) layout; b*_ref: (out, 1) columns.
    xt = x_ref[...]
    h = jnp.dot(w1_ref[...], xt, preferred_element_type=jnp.float32)   # (D_HID, TB)
    h = h + b1_ref[...]                    # (D_HID, 1) broadcasts over lanes
    h = jnp.maximum(h, 0.0)                # ReLU on VPU
    y = jnp.dot(w2_ref[...], h, preferred_element_type=jnp.float32)    # (D_OUT, TB)
    y = y + b2_ref[...]
    o_ref[...] = y.astype(o_ref.dtype)


def prepare_params(w1, b1, w2, b2):
    """One-time layout prep (hoisted out of the per-call hot path).

    PyTorch weights (out_features, in_features) already match the
    batch-in-lanes compute W @ x^T; only the biases are reshaped to (out, 1)."""
    return (jnp.asarray(w1), jnp.asarray(b1).reshape(-1, 1),
            jnp.asarray(w2), jnp.asarray(b2).reshape(-1, 1))


def _round_up(n, m):
    return ((n + m - 1) // m) * m


@functools.partial(jax.jit, static_argnames=("block_b",))
def mein_netz_forward_bm(x_t, params, *, block_b=32768):
    """Fast path, batch-minor calling convention.

    Args:
      x_t:    (10, B) float32 input, batch in the minor (lane) axis.
      params: output of prepare_params().
      block_b: max lane tile (rounded down to a multiple of 128).
    Returns:
      (10, B) float32 output (== (relu(x@W1.T+b1)@W2.T+b2).T).
    """
    w1, b1c, w2, b2c = params
    _, B = x_t.shape

    # Lane tile cap: always a multiple of 128 (lane-dense, unmasked vst).
    tb_cap = max(128, (block_b // 128) * 128)

    # Tiny batches (< one vreg of lanes) are padded once so the block never
    # exceeds the array extent; everything else uses Pallas' partial
    # last-block handling (no jnp.pad copy of x).
    if B < 128:
        x_t = jnp.pad(x_t, ((0, 0), (0, 128 - B)))
        bp = 128
    else:
        bp = B

    # Aim for grid >= 2 (both TensorCores pull DMA on megacore parts) while
    # keeping tiles as large as possible to amortize the ~0.35us/step
    # pipeline overhead (~85-90% of HBM roofline at ~32K lanes).
    tb = min(tb_cap, max(128, _round_up(pl.cdiv(bp, 2), 128)))
    grid = (pl.cdiv(bp, tb),)

    # VMEM budget: x + out double-buffered at 64*tb bytes each (sublane pad
    # 10->16) plus ~128*tb of f32 intermediates; cap at 48 MiB (v7x-safe).
    vmem_limit = int(min(max(32 * 1024 * 1024, 640 * tb), 48 * 1024 * 1024))

    def tile_spec(d):            # x / out: walk the batch (lane) axis
        return pl.BlockSpec((d, tb), lambda i: (0, i))

    def resident_spec(shape):    # weights / biases: same block every step
        return pl.BlockSpec(shape, lambda i: (0, 0))

    out_t = pl.pallas_call(
        _mlp_kernel,
        out_shape=jax.ShapeDtypeStruct((D_OUT, bp), x_t.dtype),
        grid=grid,
        in_specs=[
            tile_spec(D_IN),
            resident_spec((D_HID, D_IN)),
            resident_spec((D_HID, 1)),
            resident_spec((D_OUT, D_HID)),
            resident_spec((D_OUT, 1)),
        ],
        out_specs=tile_spec(D_OUT),
        compiler_params=pltpu.CompilerParams(
            dimension_semantics=("parallel",),        # shard batch across TCs
            vmem_limit_bytes=vmem_limit),
        cost_estimate=pl.CostEstimate(
            flops=2 * bp * (D_IN * D_HID + D_HID * D_OUT),
            transcendentals=0,
            bytes_accessed=4 * bp * (D_IN + D_OUT)
            + 4 * (w1.size + w2.size + b1c.size + b2c.size)),
    )(x_t, w1, b1c, w2, b2c)

    return out_t if bp == B else out_t[:, :B]


@functools.partial(jax.jit, static_argnames=("block_b",))
def mein_netz_forward(x, params, *, block_b=32768):
    """PyTorch-layout compat wrapper: (B, 10) -> (B, 10).

    Note: the two transposes here are extra HBM copies around a
    bandwidth-bound kernel; prefer mein_netz_forward_bm with batch-minor
    (10, B) data when the caller can provide it."""
    return mein_netz_forward_bm(x.T, params, block_b=block_b).T


def mein_netz_reference(x, w1, b1, w2, b2):
    h = jnp.maximum(x @ w1.T + b1, 0.0)
    return h @ w2.T + b2


if __name__ == "__main__":
    key = jax.random.PRNGKey(0)
    kx, kw1, kb1, kw2, kb2 = jax.random.split(key, 5)

    D = 10  # Linear(10, 10)

    # Deterministic "PyTorch-style" init: uniform(-1/sqrt(fan_in), +1/sqrt(fan_in)).
    bound = 1.0 / jnp.sqrt(jnp.float32(D))
    w1 = jax.random.uniform(kw1, (D, D), jnp.float32, -bound, bound)   # (out, in)
    b1 = jax.random.uniform(kb1, (D,),   jnp.float32, -bound, bound)
    w2 = jax.random.uniform(kw2, (D, D), jnp.float32, -bound, bound)
    b2 = jax.random.uniform(kb2, (D,),   jnp.float32, -bound, bound)
    params = prepare_params(w1, b1, w2, b2)   # one-time layout prep

    def reference(x):
        return mein_netz_reference(x, w1, b1, w2, b2)

    # 1) Small batch through the PyTorch-layout compat wrapper.
    B = 8
    x = jax.random.normal(kx, (B, D), dtype=jnp.float32)
    out = jax.block_until_ready(mein_netz_forward(x, params))
    assert out.shape == (B, D)
    assert jnp.allclose(out, reference(x), atol=1e-5, rtol=1e-5), \
        "mismatch vs reference (small batch)"

    # 2) Ragged multi-tile batch (grid=3, partial last block, no pad copy).
    B2 = 300
    x2 = jax.random.normal(kx, (B2, D), dtype=jnp.float32)
    out2 = jax.block_until_ready(mein_netz_forward(x2, params, block_b=128))
    assert out2.shape == (B2, D)
    assert jnp.allclose(out2, reference(x2), atol=1e-5, rtol=1e-5), \
        "mismatch vs reference (ragged batch)"

    # 3) Preferred batch-minor fast path (no wrapper transposes); grid=2 so
    #    both TensorCores are exercised on megacore parts.
    B3 = 512
    x3 = jax.random.normal(kx, (B3, D), dtype=jnp.float32)
    out3_t = jax.block_until_ready(mein_netz_forward_bm(x3.T, params))
    assert out3_t.shape == (D, B3)
    assert jnp.allclose(out3_t.T, reference(x3), atol=1e-5, rtol=1e-5), \
        "mismatch vs reference (batch-minor path)"

    print("KERNEL_OK")
</pallas_src>

<mosaic_0001>
module attributes {stable_mosaic.version = 11 : i64} {
  func.func @_mlp_kernel(%arg0: i32, %arg1: memref<10x128xf32, #tpu.memory_space<vmem>>, %arg2: memref<10x10xf32, #tpu.memory_space<vmem>>, %arg3: memref<10x1xf32, #tpu.memory_space<vmem>>, %arg4: memref<10x10xf32, #tpu.memory_space<vmem>>, %arg5: memref<10x1xf32, #tpu.memory_space<vmem>>, %arg6: memref<10x128xf32, #tpu.memory_space<vmem>>) attributes {dimension_semantics = [#tpu.dimension_semantics<parallel>], iteration_bounds = array<i64: 1>, scalar_prefetch = 0 : i64, scratch_operands = 0 : i64, tpu.core_type = #tpu.core_type<tc>, window_params = [{transform_indices = @transform_0, window_bounds = array<i64: 10, 128>}, {pipeline_mode = #tpu.pipeline_mode<synchronous>, transform_indices = @transform_1, window_bounds = array<i64: 10, 10>}, {pipeline_mode = #tpu.pipeline_mode<synchronous>, transform_indices = @transform_2, window_bounds = array<i64: 10, 1>}, {pipeline_mode = #tpu.pipeline_mode<synchronous>, transform_indices = @transform_3, window_bounds = array<i64: 10, 10>}, {pipeline_mode = #tpu.pipeline_mode<synchronous>, transform_indices = @transform_4, window_bounds = array<i64: 10, 1>}, {transform_indices = @transform_5, window_bounds = array<i64: 10, 128>}]} {
    %c0 = arith.constant 0 : index
    %c0_0 = arith.constant 0 : index
    %0 = vector.load %arg1[%c0, %c0_0] : memref<10x128xf32, #tpu.memory_space<vmem>>, vector<10x128xf32>
    %c0_1 = arith.constant 0 : index
    %c0_2 = arith.constant 0 : index
    %1 = vector.load %arg2[%c0_1, %c0_2] : memref<10x10xf32, #tpu.memory_space<vmem>>, vector<10x10xf32>
    %cst = arith.constant dense<0.000000e+00> : vector<10x128xf32>
    %2 = tpu.matmul %1, %0, %cst {dimension_numbers = #tpu.dot_dimension_numbers<[1], [0], [0], [1], [0, 0, 1, 1], [], []>} : vector<10x10xf32>, vector<10x128xf32>, vector<10x128xf32> -> vector<10x128xf32>
    %c0_3 = arith.constant 0 : index
    %c0_4 = arith.constant 0 : index
    %3 = vector.load %arg3[%c0_3, %c0_4] : memref<10x1xf32, #tpu.memory_space<vmem>>, vector<10x1xf32>
    %4 = vector.broadcast %3 : vector<10x1xf32> to vector<10x128xf32>
    %5 = arith.addf %2, %4 : vector<10x128xf32>
    %cst_5 = arith.constant 0.000000e+00 : f32
    %6 = vector.broadcast %cst_5 : f32 to vector<10x128xf32>
    %7 = arith.maximumf %5, %6 : vector<10x128xf32>
    %c0_6 = arith.constant 0 : index
    %c0_7 = arith.constant 0 : index
    %8 = vector.load %arg4[%c0_6, %c0_7] : memref<10x10xf32, #tpu.memory_space<vmem>>, vector<10x10xf32>
    %cst_8 = arith.constant dense<0.000000e+00> : vector<10x128xf32>
    %9 = tpu.matmul %8, %7, %cst_8 {dimension_numbers = #tpu.dot_dimension_numbers<[1], [0], [0], [1], [0, 0, 1, 1], [], []>} : vector<10x10xf32>, vector<10x128xf32>, vector<10x128xf32> -> vector<10x128xf32>
    %c0_9 = arith.constant 0 : index
    %c0_10 = arith.constant 0 : index
    %10 = vector.load %arg5[%c0_9, %c0_10] : memref<10x1xf32, #tpu.memory_space<vmem>>, vector<10x1xf32>
    %11 = vector.broadcast %10 : vector<10x1xf32> to vector<10x128xf32>
    %12 = arith.addf %9, %11 : vector<10x128xf32>
    %c0_11 = arith.constant 0 : index
    %c0_12 = arith.constant 0 : index
    %13 = vector.load %arg6[%c0_11, %c0_12] : memref<10x128xf32, #tpu.memory_space<vmem>>, vector<10x128xf32>
    tpu.vector_store %arg6[%c0_11, %c0_12], %12 {strides = array<i32>} : memref<10x128xf32, #tpu.memory_space<vmem>>, vector<10x128xf32>,
    return
  }
  func.func @transform_0(%arg0: i32) -> (i32, i32) {
    %c0_i32 = arith.constant 0 : i32
    %c0_i32_0 = arith.constant 0 : i32
    return %c0_i32, %arg0 : i32, i32
  }
  func.func @transform_1(%arg0: i32) -> (i32, i32) {
    %c0_i32 = arith.constant 0 : i32
    %c0_i32_0 = arith.constant 0 : i32
    %c0_i32_1 = arith.constant 0 : i32
    return %c0_i32, %c0_i32_0 : i32, i32
  }
  func.func @transform_2(%arg0: i32) -> (i32, i32) {
    %c0_i32 = arith.constant 0 : i32
    %c0_i32_0 = arith.constant 0 : i32
    %c0_i32_1 = arith.constant 0 : i32
    return %c0_i32, %c0_i32_0 : i32, i32
  }
  func.func @transform_3(%arg0: i32) -> (i32, i32) {
    %c0_i32 = arith.constant 0 : i32
    %c0_i32_0 = arith.constant 0 : i32
    %c0_i32_1 = arith.constant 0 : i32
    return %c0_i32, %c0_i32_0 : i32, i32
  }
  func.func @transform_4(%arg0: i32) -> (i32, i32) {
    %c0_i32 = arith.constant 0 : i32
    %c0_i32_0 = arith.constant 0 : i32
    %c0_i32_1 = arith.constant 0 : i32
    return %c0_i32, %c0_i32_0 : i32, i32
  }
  func.func @transform_5(%arg0: i32) -> (i32, i32) {
    %c0_i32 = arith.constant 0 : i32
    %c0_i32_0 = arith.constant 0 : i32
    return %c0_i32, %arg0 : i32, i32
  }
}

</mosaic_0001>

<bundles_post_ra>
// kernel: mein_netz_forward_bm.1
= control target key start
LH: loop header
LB: loop body
LE: loop exit
PB: predicated region body
PF: predicated region fallthrough
CT: control target
= control target key end

     0   :  { %vm43_vm0 = vcmask 1041408   ;;  %vm36_vm1 = vcmask 80896   ;;  %v259_v3 = vmov 0   ;;  %s334_s0 = inlined_call_operand.vmem [shape: f32[10,128], index: 0, kind: input, shape index: {}]   ;;  %s335_s1 = inlined_call_operand.vmem [shape: f32[10,10], index: 1, kind: input, shape index: {}]   ;;  %s336_s2 = inlined_call_operand.vmem [shape: f32[10,1], index: 2, kind: input, shape index: {}]   ;;  %s337_s3 = inlined_call_operand.vmem [shape: f32[10,10], index: 3, kind: input, shape index: {}]   ;;  %s338_s4 = inlined_call_operand.vmem [shape: f32[10,1], index: 4, kind: input, shape index: {}]   ;;  %s339_s5 = inlined_call_operand.vmem [shape: f32[10,128], index: 5, kind: output, shape index: {}]  }
   0x1   :  { %v21_v0 = vld [vmem:[%s334_s0 + $0x8] sm:$0x3]  ;;  %v20_v1 = vld [vmem:[%s334_s0] sm:$0xff]  ;;  %257 = vset.pattern.permute.xlu0 %v259_v3  ;;  %258 = vset.pattern.permute.xlu1 %v259_v3 }
   0x2   :  { %v22_v2 = vld [vmem:[%s335_s1] sm:$0xff]  ;;  %242 = vmatprep.subr.msk.mxu0 %vm43_vm0, %v21_v0  ;;  %v25_v4 = vld [vmem:[%s336_s2 + $0x8] sm:$0x3] }
   0x3   :  { %246 = vmatprep.mubr.msk.f32.mxu0 %vm36_vm1, %v22_v2  ;;  %243 = vmatpush3.msk.msra.mxu0 %vm43_vm0, %v21_v0  ;;  %v23_v5 = vld [vmem:[%s335_s1 + $0x8] sm:$0x3]  ;;  %v24_v6 = vld [vmem:[%s336_s2] sm:$0xff] }
   0x4   :  { %33 = vperm.xlu0 %257, %v25_v4   ;;  %244 = vmatprep.subr.mxu0 %v20_v1  ;;  %v124_v7 = vld [vmem:[%s337_s3] sm:$0xff]  ;;  %v127_v9 = vld [vmem:[%s338_s4 + $0x8] sm:$0x3] }
   0x5   :  { %245 = vmatpush3.msra.mxu0 %v20_v1  ;;  %253 = vmatprep.mubr.msk.f32.mxu1 %vm36_vm1, %v124_v7  ;;  %v126_v8 = vld [vmem:[%s338_s4] sm:$0xff]  ;;  %v125_v18 = vld [vmem:[%s337_s3 + $0x8] sm:$0x3] }
   0x6   :  { %247 = vmatmul.mubr.msk.f32.vlgmr.msra.gmra.mxu0 %vm36_vm1, %v23_v5  ;;  %130 = vperm.xlu1 %258, %v126_v8  }
   0x8   :  { %28 = vperm.xlu0 %257, %v24_v6  }
   0xa   :  { %135 = vperm.xlu1 %258, %v127_v9  }
  0x7f   :  { %v34_v10 = vpop.permute.xlu0 %33 }
  0x81   :  { %v131_v19 = vpop.permute.xlu1 %130 }
  0x83   :  { %v29_v13 = vpop.permute.xlu0 %28 }
  0x85   :  { %v136_v20 = vpop.permute.xlu1 %135 }
  0xc6   :  { %v248_v11 = vpop.f32.mrf.mxu0 }
  0xc7   :  { %v119_v12 = vadd.f32 %v248_v11, %v34_v10 }
  0xc8   :  { %v113_v14 = vpop.f32.mrf.mxu0 }
  0xc9   :  { %v123_v15 = vmax.f32 %v119_v12, 0.0  ;;  %v114_v16 = vadd.f32 %v113_v14, %v29_v13 }
  0xcb   :  { %v122_v17 = vmax.f32 %v114_v16, 0.0  ;;  %249 = vmatprep.subr.msk.mxu1 %vm43_vm0, %v123_v15 }
  0xcc   :  { %250 = vmatpush3.msk.msra.mxu1 %vm43_vm0, %v123_v15 }
  0xcd   :  { %251 = vmatprep.subr.mxu1 %v122_v17 }
  0xce   :  { %252 = vmatpush3.msra.mxu1 %v122_v17 }
  0xcf   :  { %254 = vmatmul.mubr.msk.f32.vlgmr.msra.gmra.mxu1 %vm36_vm1, %v125_v18 }
 0x18f   :  { %v255_v21 = vpop.f32.mrf.mxu1 }
 0x190   :  { %v219_v22 = vadd.f32 %v255_v21, %v136_v20 }
 0x191   :  { %v213_v23 = vpop.f32.mrf.mxu1 }
 0x192   :  { %223 = vst [vmem:[%s339_s5 + $0x8] sm:$0x3] %v219_v22  ;;  %v214_v24 = vadd.f32 %v213_v23, %v131_v19 }
 0x194   :  { %222 = vst [vmem:[%s339_s5] sm:$0xff] %v214_v24 }

</bundles_post_ra>
